<compile_context>
chip_gen: v5e
topology: v5e:2x2
jax: 0.10.0
libtpu: 0.0.40
codegen_flags: <defaults>
</compile_context>

<pallas_src>
import numpy as np
import jax
import jax.numpy as jnp
from jax.experimental import pallas as pl
from jax.experimental.pallas import tpu as pltpu  # noqa: F401  (TPU backend)

_NG = 4  # gates per LSTM cell, PyTorch order (i, f, g, o)


# ------------------------- fused LSTM + MLP kernel ---------------------------
def _fused_lstm_mlp_kernel(x_ref, len_ref, wih_ref, bias_ref, whh_ref,
                           w1_ref, b1_ref, w2_ref, b2_ref, w3_ref, b3_ref,
                           out_ref):
    """Both LSTM recurrences + input projection + MLP head, one invocation.

    x_ref   : (T*B, Da+Db)       time-major inputs, branches concat on lanes
    len_ref : (B,   Ha+Hb)       per-branch sequence length, broadcast on lanes
    wih_ref : (Da+Db, 4*(Ha+Hb)) block-diag input weights, gate-major columns
    bias_ref: (1,     4*(Ha+Hb)) combined b_ih + b_hh, gate-major
    whh_ref : (Ha+Hb, 4*(Ha+Hb)) block-diag recurrent weights (bf16)
    w*/b*   : MLP head parameters (in, out) / (1, out)
    out_ref : (B, out)
    """
    B, H2 = len_ref.shape            # H2 = Ha + Hb (combined hidden width)
    T = x_ref.shape[0] // B

    # Hoisted input projection: ONE dot for all time steps at kernel entry,
    # emitted directly in the gate-major lane-dense layout the loop consumes.
    pre = jnp.dot(x_ref[...], wih_ref[...],
                  preferred_element_type=jnp.float32) + bias_ref[...]

    whh = whh_ref[...]               # (H2, 4*H2) bf16, hoisted out of the loop
    lens = len_ref[...]              # (B, H2) float32

    h = jnp.zeros((B, H2), jnp.float32)
    c = jnp.zeros((B, H2), jnp.float32)

    # Static unroll (T small & static).  TODO(synk): switch to lax.fori_loop
    # with pl.ds-indexed `pre` if T grows beyond ~32 (vreg-pressure guard).
    for t in range(T):
        # ONE recurrent matmul per step for BOTH branches and ALL four gates.
        rec = jnp.dot(h.astype(jnp.bfloat16), whh,
                      preferred_element_type=jnp.float32)
        g_all = pre[t * B:(t + 1) * B, :] + rec             # (B, 4*H2)

        i_g = jax.nn.sigmoid(g_all[:, 0 * H2:1 * H2])
        f_g = jax.nn.sigmoid(g_all[:, 1 * H2:2 * H2])
        g_g = jnp.tanh(g_all[:, 2 * H2:3 * H2])
        o_g = jax.nn.sigmoid(g_all[:, 3 * H2:4 * H2])

        c_new = f_g * c + i_g * g_g
        h_new = o_g * jnp.tanh(c_new)

        # pack_padded_sequence semantics: freeze state once t >= length[b].
        m = lens > t
        h = jnp.where(m, h_new, h)
        c = jnp.where(m, c_new, c)

    # MLP head; h is already [h_a | h_b], so no concat is needed.
    v = jnp.maximum(h, 0.0)
    v = jnp.dot(v, w1_ref[...], preferred_element_type=jnp.float32) + b1_ref[...]
    v = jnp.maximum(v, 0.0)
    v = jnp.dot(v, w2_ref[...], preferred_element_type=jnp.float32) + b2_ref[...]
    v = jnp.maximum(v, 0.0)
    v = jnp.dot(v, w3_ref[...], preferred_element_type=jnp.float32) + b3_ref[...]
    out_ref[...] = v


# ------------------------------ packing helpers -------------------------------
def _pack_gate_major(blk_a, blk_b):
    """blk_*: (4, K_*, H_*) per-gate (K, H) weight blocks (already transposed
    for right-multiplication).  Returns (K_a + K_b, 4*(H_a + H_b)):
    per-gate block-diagonal, gate-major columns [g0_a g0_b | g1_a g1_b | ...]."""
    Ka, Ha = blk_a.shape[1], blk_a.shape[2]
    Kb, Hb = blk_b.shape[1], blk_b.shape[2]
    cols = []
    for g in range(_NG):
        top = jnp.concatenate([blk_a[g], jnp.zeros((Ka, Hb), blk_a.dtype)], axis=1)
        bot = jnp.concatenate([jnp.zeros((Kb, Ha), blk_b.dtype), blk_b[g]], axis=1)
        cols.append(jnp.concatenate([top, bot], axis=0))
    return jnp.concatenate(cols, axis=1)


# ------------------------------ full forward ---------------------------------
def lstm_model_forward(params, a, a_len, b, b_len):
    """a: (B, Ta, Da), b: (B, Tb, Db) batch-first f32; *_len: (B,) int.
    Returns (B, out_size)."""
    pa, pb = params["a"], params["b"]
    B, Ta, Da = a.shape
    Bb, Tb, Db = b.shape
    assert B == Bb
    Ha = pa["whh_gt"].shape[-1]
    Hb = pb["whh_gt"].shape[-1]
    H2 = Ha + Hb
    T = max(Ta, Tb)

    # --- weight packing (tiny; could be hoisted out of the per-call forward) --
    wih_a_t = jnp.transpose(pa["wih_g"], (0, 2, 1))          # (4, Da, Ha)
    wih_b_t = jnp.transpose(pb["wih_g"], (0, 2, 1))          # (4, Db, Hb)
    wih_bd = _pack_gate_major(wih_a_t, wih_b_t)              # (Da+Db, 4*H2) f32
    whh_bd = _pack_gate_major(pa["whh_gt"], pb["whh_gt"])    # (H2, 4*H2)
    whh_bd = whh_bd.astype(jnp.bfloat16)                     # bf16 recurrent wts
    bias_bd = jnp.concatenate(
        [jnp.concatenate([pa["bias_g"][g], pb["bias_g"][g]]) for g in range(_NG)]
    ).reshape(1, _NG * H2).astype(jnp.float32)

    # --- inputs: time-major, branch-concatenated, flattened over (T, B) ------
    a_p = a if Ta == T else jnp.pad(a, ((0, 0), (0, T - Ta), (0, 0)))
    b_p = b if Tb == T else jnp.pad(b, ((0, 0), (0, T - Tb), (0, 0)))
    x = jnp.concatenate([a_p, b_p], axis=-1)                 # (B, T, Da+Db)
    x = jnp.transpose(x, (1, 0, 2)).reshape(T * B, Da + Db).astype(jnp.float32)

    # Per-(batch, branch-lane) length map: replaces the old (T*2, B, H) mask.
    lens = jnp.concatenate(
        [jnp.broadcast_to(a_len.astype(jnp.float32)[:, None], (B, Ha)),
         jnp.broadcast_to(b_len.astype(jnp.float32)[:, None], (B, Hb))], axis=1)

    (w1, b1), (w2, b2), (w3, b3) = params["linears"]
    out_size = w3.shape[1]

    # Single fused gridless kernel: all operands are tiny whole-array VMEM blocks.
    return pl.pallas_call(
        _fused_lstm_mlp_kernel,
        out_shape=jax.ShapeDtypeStruct((B, out_size), jnp.float32),
    )(x, lens, wih_bd, bias_bd, whh_bd, w1, b1, w2, b2, w3, b3)


# ----------------------------- parameter init --------------------------------
def init_params(key, lstms_in_out=((5, 5), (5, 5)), linear_layers=(10, 5),
                out_size=1):
    params = {}

    def uniform(k, shape, bound):
        return jax.random.uniform(k, shape, jnp.float32, -bound, bound)

    keys = jax.random.split(key, 16)
    ki = iter(keys)

    for name, (din, h) in zip(("a", "b"), lstms_in_out):
        bound = 1.0 / np.sqrt(h)
        w_ih = uniform(next(ki), (4 * h, din), bound)   # PyTorch layout (4H, D)
        w_hh = uniform(next(ki), (4 * h, h), bound)     # (4H, H)
        b_ih = uniform(next(ki), (4 * h,), bound)
        b_hh = uniform(next(ki), (4 * h,), bound)
        params[name] = dict(
            wih_g=w_ih.reshape(4, h, din),                           # (4, H, D)
            whh_gt=jnp.transpose(w_hh.reshape(4, h, h), (0, 2, 1)),  # (4,H,H)=W_hh[g]^T
            bias_g=(b_ih + b_hh).reshape(4, h),                      # (4, H)
        )

    concat = lstms_in_out[0][1] + lstms_in_out[1][1]
    dims = [concat] + list(linear_layers) + [out_size]
    lin = []
    for din, dout in zip(dims[:-1], dims[1:]):
        bound = 1.0 / np.sqrt(din)
        w = uniform(next(ki), (din, dout), bound)     # stored (in, out)
        bb = uniform(next(ki), (1, dout), bound)
        lin.append((w, bb))
    params["linears"] = lin
    return params


# --------------------------- pure-JAX reference ------------------------------
def _lstm_ref(x, lengths, wih_g, whh_gt, bias_g):
    B, T, D = x.shape
    H = whh_gt.shape[-1]
    wih_t = wih_g.reshape(4 * H, D).T                              # (D, 4H)
    whh_t = jnp.transpose(whh_gt, (1, 0, 2)).reshape(H, 4 * H)     # (H, 4H)
    bias = bias_g.reshape(1, 4 * H)
    len2 = lengths.astype(jnp.int32).reshape(B, 1)

    def step(carry, inp):
        h, c = carry
        x_t, t = inp
        gates = x_t @ wih_t + h @ whh_t + bias
        i = jax.nn.sigmoid(gates[:, :H])
        f = jax.nn.sigmoid(gates[:, H:2 * H])
        g = jnp.tanh(gates[:, 2 * H:3 * H])
        o = jax.nn.sigmoid(gates[:, 3 * H:])
        c_new = f * c + i * g
        h_new = o * jnp.tanh(c_new)
        m = t < len2
        return (jnp.where(m, h_new, h), jnp.where(m, c_new, c)), None

    h0 = jnp.zeros((B, H), jnp.float32)
    c0 = jnp.zeros((B, H), jnp.float32)
    (h, _), _ = jax.lax.scan(step, (h0, c0),
                             (jnp.swapaxes(x, 0, 1), jnp.arange(T)))
    return h


def _forward_ref(params, a, a_len, b, b_len):
    pa, pb = params["a"], params["b"]
    h_a = _lstm_ref(a, a_len, pa["wih_g"], pa["whh_gt"], pa["bias_g"])
    h_b = _lstm_ref(b, b_len, pb["wih_g"], pb["whh_gt"], pb["bias_g"])
    v = jnp.concatenate([h_a, h_b], axis=-1)
    for w, bb in params["linears"]:
        v = jnp.maximum(v, 0.0)
        v = v @ w + bb
    return v


# ---------------------------------- main --------------------------------------
if __name__ == "__main__":
    key = jax.random.PRNGKey(0)
    k_param, k_a, k_b = jax.random.split(key, 3)

    B, Ta, Tb, D = 2, 8, 6, 5          # input/hidden sizes per default config
    params = init_params(k_param)

    a = jax.random.normal(k_a, (B, Ta, D), jnp.float32)
    b = jax.random.normal(k_b, (B, Tb, D), jnp.float32)
    a_len = jnp.array([8, 5], jnp.int32)
    b_len = jnp.array([6, 3], jnp.int32)

    fwd = jax.jit(lstm_model_forward)
    out = jax.block_until_ready(fwd(params, a, a_len, b, b_len))

    ref = _forward_ref(params, a, a_len, b, b_len)
    # Recurrent dots run with bf16 operands (f32 accumulate) -> slightly
    # looser tolerance than pure-f32, still far below any layout/gating bug.
    np.testing.assert_allclose(np.asarray(out), np.asarray(ref),
                               rtol=5e-3, atol=5e-3)
    assert out.shape == (B, 1)
    print("KERNEL_OK")
</pallas_src>

<mosaic_0001>
module attributes {stable_mosaic.version = 11 : i64} {
  func.func @_fused_lstm_mlp_kernel(%arg0: memref<16x10xf32, #tpu.memory_space<vmem>>, %arg1: memref<2x10xf32, #tpu.memory_space<vmem>>, %arg2: memref<10x40xf32, #tpu.memory_space<vmem>>, %arg3: memref<1x40xf32, #tpu.memory_space<vmem>>, %arg4: memref<10x40xbf16, #tpu.memory_space<vmem>>, %arg5: memref<10x10xf32, #tpu.memory_space<vmem>>, %arg6: memref<1x10xf32, #tpu.memory_space<vmem>>, %arg7: memref<10x5xf32, #tpu.memory_space<vmem>>, %arg8: memref<1x5xf32, #tpu.memory_space<vmem>>, %arg9: memref<5x1xf32, #tpu.memory_space<vmem>>, %arg10: memref<1x1xf32, #tpu.memory_space<vmem>>, %arg11: memref<2x1xf32, #tpu.memory_space<vmem>>) attributes {dimension_semantics = [], scalar_prefetch = 0 : i64, scratch_operands = 0 : i64, tpu.core_type = #tpu.core_type<tc>} {
    %c0 = arith.constant 0 : index
    %c0_0 = arith.constant 0 : index
    %0 = vector.load %arg0[%c0, %c0_0] : memref<16x10xf32, #tpu.memory_space<vmem>>, vector<16x10xf32>
    %c0_1 = arith.constant 0 : index
    %c0_2 = arith.constant 0 : index
    %1 = vector.load %arg2[%c0_1, %c0_2] : memref<10x40xf32, #tpu.memory_space<vmem>>, vector<10x40xf32>
    %cst = arith.constant dense<0.000000e+00> : vector<16x40xf32>
    %2 = tpu.matmul %0, %1, %cst {dimension_numbers = #tpu.dot_dimension_numbers<[1], [0], [0], [1], [0, 0, 1, 1], [], []>} : vector<16x10xf32>, vector<10x40xf32>, vector<16x40xf32> -> vector<16x40xf32>
    %c0_3 = arith.constant 0 : index
    %c0_4 = arith.constant 0 : index
    %3 = vector.load %arg3[%c0_3, %c0_4] : memref<1x40xf32, #tpu.memory_space<vmem>>, vector<1x40xf32>
    %4 = vector.broadcast %3 : vector<1x40xf32> to vector<16x40xf32>
    %5 = arith.addf %2, %4 : vector<16x40xf32>
    %c0_5 = arith.constant 0 : index
    %c0_6 = arith.constant 0 : index
    %6 = vector.load %arg4[%c0_5, %c0_6] : memref<10x40xbf16, #tpu.memory_space<vmem>>, vector<10x40xbf16>
    %c0_7 = arith.constant 0 : index
    %c0_8 = arith.constant 0 : index
    %7 = vector.load %arg1[%c0_7, %c0_8] : memref<2x10xf32, #tpu.memory_space<vmem>>, vector<2x10xf32>
    %cst_9 = arith.constant 0.000000e+00 : f32
    %8 = vector.broadcast %cst_9 : f32 to vector<2x10xf32>
    %cst_10 = arith.constant 0.000000e+00 : f32
    %9 = vector.broadcast %cst_10 : f32 to vector<2x10xf32>
    %10 = arith.truncf %8 : vector<2x10xf32> to vector<2x10xbf16>
    %cst_11 = arith.constant dense<0.000000e+00> : vector<2x40xf32>
    %11 = tpu.matmul %10, %6, %cst_11 {dimension_numbers = #tpu.dot_dimension_numbers<[1], [0], [0], [1], [0, 0, 1, 1], [], []>} : vector<2x10xbf16>, vector<10x40xbf16>, vector<2x40xf32> -> vector<2x40xf32>
    %12 = vector.extract_strided_slice %5 {offsets = [0, 0], sizes = [2, 40], strides = [1, 1]} : vector<16x40xf32> to vector<2x40xf32>
    %13 = arith.addf %12, %11 : vector<2x40xf32>
    %14 = vector.extract_strided_slice %13 {offsets = [0, 0], sizes = [2, 10], strides = [1, 1]} : vector<2x40xf32> to vector<2x10xf32>
    %15 = arith.negf %14 : vector<2x10xf32>
    %16 = math.exp %15 : vector<2x10xf32>
    %cst_12 = arith.constant 1.000000e+00 : f32
    %17 = vector.broadcast %cst_12 : f32 to vector<2x10xf32>
    %18 = arith.addf %17, %16 : vector<2x10xf32>
    %19 = arith.divf %17, %18 : vector<2x10xf32>
    %20 = vector.extract_strided_slice %13 {offsets = [0, 10], sizes = [2, 10], strides = [1, 1]} : vector<2x40xf32> to vector<2x10xf32>
    %21 = arith.negf %20 : vector<2x10xf32>
    %22 = math.exp %21 : vector<2x10xf32>
    %cst_13 = arith.constant 1.000000e+00 : f32
    %23 = vector.broadcast %cst_13 : f32 to vector<2x10xf32>
    %24 = arith.addf %23, %22 : vector<2x10xf32>
    %25 = arith.divf %23, %24 : vector<2x10xf32>
    %26 = vector.extract_strided_slice %13 {offsets = [0, 20], sizes = [2, 10], strides = [1, 1]} : vector<2x40xf32> to vector<2x10xf32>
    %27 = math.tanh %26 : vector<2x10xf32>
    %28 = vector.extract_strided_slice %13 {offsets = [0, 30], sizes = [2, 10], strides = [1, 1]} : vector<2x40xf32> to vector<2x10xf32>
    %29 = arith.negf %28 : vector<2x10xf32>
    %30 = math.exp %29 : vector<2x10xf32>
    %cst_14 = arith.constant 1.000000e+00 : f32
    %31 = vector.broadcast %cst_14 : f32 to vector<2x10xf32>
    %32 = arith.addf %31, %30 : vector<2x10xf32>
    %33 = arith.divf %31, %32 : vector<2x10xf32>
    %34 = arith.mulf %25, %9 : vector<2x10xf32>
    %35 = arith.mulf %19, %27 : vector<2x10xf32>
    %36 = arith.addf %34, %35 : vector<2x10xf32>
    %37 = math.tanh %36 : vector<2x10xf32>
    %38 = arith.mulf %33, %37 : vector<2x10xf32>
    %cst_15 = arith.constant 0.000000e+00 : f32
    %39 = vector.broadcast %cst_15 : f32 to vector<2x10xf32>
    %40 = arith.cmpf ogt, %7, %39 : vector<2x10xf32>
    %41 = arith.select %40, %38, %8 : vector<2x10xi1>, vector<2x10xf32>
    %42 = arith.select %40, %36, %9 : vector<2x10xi1>, vector<2x10xf32>
    %43 = arith.truncf %41 : vector<2x10xf32> to vector<2x10xbf16>
    %cst_16 = arith.constant dense<0.000000e+00> : vector<2x40xf32>
    %44 = tpu.matmul %43, %6, %cst_16 {dimension_numbers = #tpu.dot_dimension_numbers<[1], [0], [0], [1], [0, 0, 1, 1], [], []>} : vector<2x10xbf16>, vector<10x40xbf16>, vector<2x40xf32> -> vector<2x40xf32>
    %45 = vector.extract_strided_slice %5 {offsets = [2, 0], sizes = [2, 40], strides = [1, 1]} : vector<16x40xf32> to vector<2x40xf32>
    %46 = arith.addf %45, %44 : vector<2x40xf32>
    %47 = vector.extract_strided_slice %46 {offsets = [0, 0], sizes = [2, 10], strides = [1, 1]} : vector<2x40xf32> to vector<2x10xf32>
    %48 = arith.negf %47 : vector<2x10xf32>
    %49 = math.exp %48 : vector<2x10xf32>
    %cst_17 = arith.constant 1.000000e+00 : f32
    %50 = vector.broadcast %cst_17 : f32 to vector<2x10xf32>
    %51 = arith.addf %50, %49 : vector<2x10xf32>
    %52 = arith.divf %50, %51 : vector<2x10xf32>
    %53 = vector.extract_strided_slice %46 {offsets = [0, 10], sizes = [2, 10], strides = [1, 1]} : vector<2x40xf32> to vector<2x10xf32>
    %54 = arith.negf %53 : vector<2x10xf32>
    %55 = math.exp %54 : vector<2x10xf32>
    %cst_18 = arith.constant 1.000000e+00 : f32
    %56 = vector.broadcast %cst_18 : f32 to vector<2x10xf32>
    %57 = arith.addf %56, %55 : vector<2x10xf32>
    %58 = arith.divf %56, %57 : vector<2x10xf32>
    %59 = vector.extract_strided_slice %46 {offsets = [0, 20], sizes = [2, 10], strides = [1, 1]} : vector<2x40xf32> to vector<2x10xf32>
    %60 = math.tanh %59 : vector<2x10xf32>
    %61 = vector.extract_strided_slice %46 {offsets = [0, 30], sizes = [2, 10], strides = [1, 1]} : vector<2x40xf32> to vector<2x10xf32>
    %62 = arith.negf %61 : vector<2x10xf32>
    %63 = math.exp %62 : vector<2x10xf32>
    %cst_19 = arith.constant 1.000000e+00 : f32
    %64 = vector.broadcast %cst_19 : f32 to vector<2x10xf32>
    %65 = arith.addf %64, %63 : vector<2x10xf32>
    %66 = arith.divf %64, %65 : vector<2x10xf32>
    %67 = arith.mulf %58, %42 : vector<2x10xf32>
    %68 = arith.mulf %52, %60 : vector<2x10xf32>
    %69 = arith.addf %67, %68 : vector<2x10xf32>
    %70 = math.tanh %69 : vector<2x10xf32>
    %71 = arith.mulf %66, %70 : vector<2x10xf32>
    %cst_20 = arith.constant 1.000000e+00 : f32
    %72 = vector.broadcast %cst_20 : f32 to vector<2x10xf32>
    %73 = arith.cmpf ogt, %7, %72 : vector<2x10xf32>
    %74 = arith.select %73, %71, %41 : vector<2x10xi1>, vector<2x10xf32>
    %75 = arith.select %73, %69, %42 : vector<2x10xi1>, vector<2x10xf32>
    %76 = arith.truncf %74 : vector<2x10xf32> to vector<2x10xbf16>
    %cst_21 = arith.constant dense<0.000000e+00> : vector<2x40xf32>
    %77 = tpu.matmul %76, %6, %cst_21 {dimension_numbers = #tpu.dot_dimension_numbers<[1], [0], [0], [1], [0, 0, 1, 1], [], []>} : vector<2x10xbf16>, vector<10x40xbf16>, vector<2x40xf32> -> vector<2x40xf32>
    %78 = vector.extract_strided_slice %5 {offsets = [4, 0], sizes = [2, 40], strides = [1, 1]} : vector<16x40xf32> to vector<2x40xf32>
    %79 = arith.addf %78, %77 : vector<2x40xf32>
    %80 = vector.extract_strided_slice %79 {offsets = [0, 0], sizes = [2, 10], strides = [1, 1]} : vector<2x40xf32> to vector<2x10xf32>
    %81 = arith.negf %80 : vector<2x10xf32>
    %82 = math.exp %81 : vector<2x10xf32>
    %cst_22 = arith.constant 1.000000e+00 : f32
    %83 = vector.broadcast %cst_22 : f32 to vector<2x10xf32>
    %84 = arith.addf %83, %82 : vector<2x10xf32>
    %85 = arith.divf %83, %84 : vector<2x10xf32>
    %86 = vector.extract_strided_slice %79 {offsets = [0, 10], sizes = [2, 10], strides = [1, 1]} : vector<2x40xf32> to vector<2x10xf32>
    %87 = arith.negf %86 : vector<2x10xf32>
    %88 = math.exp %87 : vector<2x10xf32>
    %cst_23 = arith.constant 1.000000e+00 : f32
    %89 = vector.broadcast %cst_23 : f32 to vector<2x10xf32>
    %90 = arith.addf %89, %88 : vector<2x10xf32>
    %91 = arith.divf %89, %90 : vector<2x10xf32>
    %92 = vector.extract_strided_slice %79 {offsets = [0, 20], sizes = [2, 10], strides = [1, 1]} : vector<2x40xf32> to vector<2x10xf32>
    %93 = math.tanh %92 : vector<2x10xf32>
    %94 = vector.extract_strided_slice %79 {offsets = [0, 30], sizes = [2, 10], strides = [1, 1]} : vector<2x40xf32> to vector<2x10xf32>
    %95 = arith.negf %94 : vector<2x10xf32>
    %96 = math.exp %95 : vector<2x10xf32>
    %cst_24 = arith.constant 1.000000e+00 : f32
    %97 = vector.broadcast %cst_24 : f32 to vector<2x10xf32>
    %98 = arith.addf %97, %96 : vector<2x10xf32>
    %99 = arith.divf %97, %98 : vector<2x10xf32>
    %100 = arith.mulf %91, %75 : vector<2x10xf32>
    %101 = arith.mulf %85, %93 : vector<2x10xf32>
    %102 = arith.addf %100, %101 : vector<2x10xf32>
    %103 = math.tanh %102 : vector<2x10xf32>
    %104 = arith.mulf %99, %103 : vector<2x10xf32>
    %cst_25 = arith.constant 2.000000e+00 : f32
    %105 = vector.broadcast %cst_25 : f32 to vector<2x10xf32>
    %106 = arith.cmpf ogt, %7, %105 : vector<2x10xf32>
    %107 = arith.select %106, %104, %74 : vector<2x10xi1>, vector<2x10xf32>
    %108 = arith.select %106, %102, %75 : vector<2x10xi1>, vector<2x10xf32>
    %109 = arith.truncf %107 : vector<2x10xf32> to vector<2x10xbf16>
    %cst_26 = arith.constant dense<0.000000e+00> : vector<2x40xf32>
    %110 = tpu.matmul %109, %6, %cst_26 {dimension_numbers = #tpu.dot_dimension_numbers<[1], [0], [0], [1], [0, 0, 1, 1], [], []>} : vector<2x10xbf16>, vector<10x40xbf16>, vector<2x40xf32> -> vector<2x40xf32>
    %111 = vector.extract_strided_slice %5 {offsets = [6, 0], sizes = [2, 40], strides = [1, 1]} : vector<16x40xf32> to vector<2x40xf32>
    %112 = arith.addf %111, %110 : vector<2x40xf32>
    %113 = vector.extract_strided_slice %112 {offsets = [0, 0], sizes = [2, 10], strides = [1, 1]} : vector<2x40xf32> to vector<2x10xf32>
    %114 = arith.negf %113 : vector<2x10xf32>
    %115 = math.exp %114 : vector<2x10xf32>
    %cst_27 = arith.constant 1.000000e+00 : f32
    %116 = vector.broadcast %cst_27 : f32 to vector<2x10xf32>
    %117 = arith.addf %116, %115 : vector<2x10xf32>
    %118 = arith.divf %116, %117 : vector<2x10xf32>
    %119 = vector.extract_strided_slice %112 {offsets = [0, 10], sizes = [2, 10], strides = [1, 1]} : vector<2x40xf32> to vector<2x10xf32>
    %120 = arith.negf %119 : vector<2x10xf32>
    %121 = math.exp %120 : vector<2x10xf32>
    %cst_28 = arith.constant 1.000000e+00 : f32
    %122 = vector.broadcast %cst_28 : f32 to vector<2x10xf32>
    %123 = arith.addf %122, %121 : vector<2x10xf32>
    %124 = arith.divf %122, %123 : vector<2x10xf32>
    %125 = vector.extract_strided_slice %112 {offsets = [0, 20], sizes = [2, 10], strides = [1, 1]} : vector<2x40xf32> to vector<2x10xf32>
    %126 = math.tanh %125 : vector<2x10xf32>
    %127 = vector.extract_strided_slice %112 {offsets = [0, 30], sizes = [2, 10], strides = [1, 1]} : vector<2x40xf32> to vector<2x10xf32>
    %128 = arith.negf %127 : vector<2x10xf32>
    %129 = math.exp %128 : vector<2x10xf32>
    %cst_29 = arith.constant 1.000000e+00 : f32
    %130 = vector.broadcast %cst_29 : f32 to vector<2x10xf32>
    %131 = arith.addf %130, %129 : vector<2x10xf32>
    %132 = arith.divf %130, %131 : vector<2x10xf32>
    %133 = arith.mulf %124, %108 : vector<2x10xf32>
    %134 = arith.mulf %118, %126 : vector<2x10xf32>
    %135 = arith.addf %133, %134 : vector<2x10xf32>
    %136 = math.tanh %135 : vector<2x10xf32>
    %137 = arith.mulf %132, %136 : vector<2x10xf32>
    %cst_30 = arith.constant 3.000000e+00 : f32
    %138 = vector.broadcast %cst_30 : f32 to vector<2x10xf32>
    %139 = arith.cmpf ogt, %7, %138 : vector<2x10xf32>
    %140 = arith.select %139, %137, %107 : vector<2x10xi1>, vector<2x10xf32>
    %141 = arith.select %139, %135, %108 : vector<2x10xi1>, vector<2x10xf32>
    %142 = arith.truncf %140 : vector<2x10xf32> to vector<2x10xbf16>
    %cst_31 = arith.constant dense<0.000000e+00> : vector<2x40xf32>
    %143 = tpu.matmul %142, %6, %cst_31 {dimension_numbers = #tpu.dot_dimension_numbers<[1], [0], [0], [1], [0, 0, 1, 1], [], []>} : vector<2x10xbf16>, vector<10x40xbf16>, vector<2x40xf32> -> vector<2x40xf32>
    %144 = vector.extract_strided_slice %5 {offsets = [8, 0], sizes = [2, 40], strides = [1, 1]} : vector<16x40xf32> to vector<2x40xf32>
    %145 = arith.addf %144, %143 : vector<2x40xf32>
    %146 = vector.extract_strided_slice %145 {offsets = [0, 0], sizes = [2, 10], strides = [1, 1]} : vector<2x40xf32> to vector<2x10xf32>
    %147 = arith.negf %146 : vector<2x10xf32>
    %148 = math.exp %147 : vector<2x10xf32>
    %cst_32 = arith.constant 1.000000e+00 : f32
    %149 = vector.broadcast %cst_32 : f32 to vector<2x10xf32>
    %150 = arith.addf %149, %148 : vector<2x10xf32>
    %151 = arith.divf %149, %150 : vector<2x10xf32>
    %152 = vector.extract_strided_slice %145 {offsets = [0, 10], sizes = [2, 10], strides = [1, 1]} : vector<2x40xf32> to vector<2x10xf32>
    %153 = arith.negf %152 : vector<2x10xf32>
    %154 = math.exp %153 : vector<2x10xf32>
    %cst_33 = arith.constant 1.000000e+00 : f32
    %155 = vector.broadcast %cst_33 : f32 to vector<2x10xf32>
    %156 = arith.addf %155, %154 : vector<2x10xf32>
    %157 = arith.divf %155, %156 : vector<2x10xf32>
    %158 = vector.extract_strided_slice %145 {offsets = [0, 20], sizes = [2, 10], strides = [1, 1]} : vector<2x40xf32> to vector<2x10xf32>
    %159 = math.tanh %158 : vector<2x10xf32>
    %160 = vector.extract_strided_slice %145 {offsets = [0, 30], sizes = [2, 10], strides = [1, 1]} : vector<2x40xf32> to vector<2x10xf32>
    %161 = arith.negf %160 : vector<2x10xf32>
    %162 = math.exp %161 : vector<2x10xf32>
    %cst_34 = arith.constant 1.000000e+00 : f32
    %163 = vector.broadcast %cst_34 : f32 to vector<2x10xf32>
    %164 = arith.addf %163, %162 : vector<2x10xf32>
    %165 = arith.divf %163, %164 : vector<2x10xf32>
    %166 = arith.mulf %157, %141 : vector<2x10xf32>
    %167 = arith.mulf %151, %159 : vector<2x10xf32>
    %168 = arith.addf %166, %167 : vector<2x10xf32>
    %169 = math.tanh %168 : vector<2x10xf32>
    %170 = arith.mulf %165, %169 : vector<2x10xf32>
    %cst_35 = arith.constant 4.000000e+00 : f32
    %171 = vector.broadcast %cst_35 : f32 to vector<2x10xf32>
    %172 = arith.cmpf ogt, %7, %171 : vector<2x10xf32>
    %173 = arith.select %172, %170, %140 : vector<2x10xi1>, vector<2x10xf32>
    %174 = arith.select %172, %168, %141 : vector<2x10xi1>, vector<2x10xf32>
    %175 = arith.truncf %173 : vector<2x10xf32> to vector<2x10xbf16>
    %cst_36 = arith.constant dense<0.000000e+00> : vector<2x40xf32>
    %176 = tpu.matmul %175, %6, %cst_36 {dimension_numbers = #tpu.dot_dimension_numbers<[1], [0], [0], [1], [0, 0, 1, 1], [], []>} : vector<2x10xbf16>, vector<10x40xbf16>, vector<2x40xf32> -> vector<2x40xf32>
    %177 = vector.extract_strided_slice %5 {offsets = [10, 0], sizes = [2, 40], strides = [1, 1]} : vector<16x40xf32> to vector<2x40xf32>
    %178 = arith.addf %177, %176 : vector<2x40xf32>
    %179 = vector.extract_strided_slice %178 {offsets = [0, 0], sizes = [2, 10], strides = [1, 1]} : vector<2x40xf32> to vector<2x10xf32>
    %180 = arith.negf %179 : vector<2x10xf32>
    %181 = math.exp %180 : vector<2x10xf32>
    %cst_37 = arith.constant 1.000000e+00 : f32
    %182 = vector.broadcast %cst_37 : f32 to vector<2x10xf32>
    %183 = arith.addf %182, %181 : vector<2x10xf32>
    %184 = arith.divf %182, %183 : vector<2x10xf32>
    %185 = vector.extract_strided_slice %178 {offsets = [0, 10], sizes = [2, 10], strides = [1, 1]} : vector<2x40xf32> to vector<2x10xf32>
    %186 = arith.negf %185 : vector<2x10xf32>
    %187 = math.exp %186 : vector<2x10xf32>
    %cst_38 = arith.constant 1.000000e+00 : f32
    %188 = vector.broadcast %cst_38 : f32 to vector<2x10xf32>
    %189 = arith.addf %188, %187 : vector<2x10xf32>
    %190 = arith.divf %188, %189 : vector<2x10xf32>
    %191 = vector.extract_strided_slice %178 {offsets = [0, 20], sizes = [2, 10], strides = [1, 1]} : vector<2x40xf32> to vector<2x10xf32>
    %192 = math.tanh %191 : vector<2x10xf32>
    %193 = vector.extract_strided_slice %178 {offsets = [0, 30], sizes = [2, 10], strides = [1, 1]} : vector<2x40xf32> to vector<2x10xf32>
    %194 = arith.negf %193 : vector<2x10xf32>
    %195 = math.exp %194 : vector<2x10xf32>
    %cst_39 = arith.constant 1.000000e+00 : f32
    %196 = vector.broadcast %cst_39 : f32 to vector<2x10xf32>
    %197 = arith.addf %196, %195 : vector<2x10xf32>
    %198 = arith.divf %196, %197 : vector<2x10xf32>
    %199 = arith.mulf %190, %174 : vector<2x10xf32>
    %200 = arith.mulf %184, %192 : vector<2x10xf32>
    %201 = arith.addf %199, %200 : vector<2x10xf32>
    %202 = math.tanh %201 : vector<2x10xf32>
    %203 = arith.mulf %198, %202 : vector<2x10xf32>
    %cst_40 = arith.constant 5.000000e+00 : f32
    %204 = vector.broadcast %cst_40 : f32 to vector<2x10xf32>
    %205 = arith.cmpf ogt, %7, %204 : vector<2x10xf32>
    %206 = arith.select %205, %203, %173 : vector<2x10xi1>, vector<2x10xf32>
    %207 = arith.select %205, %201, %174 : vector<2x10xi1>, vector<2x10xf32>
    %208 = arith.truncf %206 : vector<2x10xf32> to vector<2x10xbf16>
    %cst_41 = arith.constant dense<0.000000e+00> : vector<2x40xf32>
    %209 = tpu.matmul %208, %6, %cst_41 {dimension_numbers = #tpu.dot_dimension_numbers<[1], [0], [0], [1], [0, 0, 1, 1], [], []>} : vector<2x10xbf16>, vector<10x40xbf16>, vector<2x40xf32> -> vector<2x40xf32>
    %210 = vector.extract_strided_slice %5 {offsets = [12, 0], sizes = [2, 40], strides = [1, 1]} : vector<16x40xf32> to vector<2x40xf32>
    %211 = arith.addf %210, %209 : vector<2x40xf32>
    %212 = vector.extract_strided_slice %211 {offsets = [0, 0], sizes = [2, 10], strides = [1, 1]} : vector<2x40xf32> to vector<2x10xf32>
    %213 = arith.negf %212 : vector<2x10xf32>
    %214 = math.exp %213 : vector<2x10xf32>
    %cst_42 = arith.constant 1.000000e+00 : f32
    %215 = vector.broadcast %cst_42 : f32 to vector<2x10xf32>
    %216 = arith.addf %215, %214 : vector<2x10xf32>
    %217 = arith.divf %215, %216 : vector<2x10xf32>
    %218 = vector.extract_strided_slice %211 {offsets = [0, 10], sizes = [2, 10], strides = [1, 1]} : vector<2x40xf32> to vector<2x10xf32>
    %219 = arith.negf %218 : vector<2x10xf32>
    %220 = math.exp %219 : vector<2x10xf32>
    %cst_43 = arith.constant 1.000000e+00 : f32
    %221 = vector.broadcast %cst_43 : f32 to vector<2x10xf32>
    %222 = arith.addf %221, %220 : vector<2x10xf32>
    %223 = arith.divf %221, %222 : vector<2x10xf32>
    %224 = vector.extract_strided_slice %211 {offsets = [0, 20], sizes = [2, 10], strides = [1, 1]} : vector<2x40xf32> to vector<2x10xf32>
    %225 = math.tanh %224 : vector<2x10xf32>
    %226 = vector.extract_strided_slice %211 {offsets = [0, 30], sizes = [2, 10], strides = [1, 1]} : vector<2x40xf32> to vector<2x10xf32>
    %227 = arith.negf %226 : vector<2x10xf32>
    %228 = math.exp %227 : vector<2x10xf32>
    %cst_44 = arith.constant 1.000000e+00 : f32
    %229 = vector.broadcast %cst_44 : f32 to vector<2x10xf32>
    %230 = arith.addf %229, %228 : vector<2x10xf32>
    %231 = arith.divf %229, %230 : vector<2x10xf32>
    %232 = arith.mulf %223, %207 : vector<2x10xf32>
    %233 = arith.mulf %217, %225 : vector<2x10xf32>
    %234 = arith.addf %232, %233 : vector<2x10xf32>
    %235 = math.tanh %234 : vector<2x10xf32>
    %236 = arith.mulf %231, %235 : vector<2x10xf32>
    %cst_45 = arith.constant 6.000000e+00 : f32
    %237 = vector.broadcast %cst_45 : f32 to vector<2x10xf32>
    %238 = arith.cmpf ogt, %7, %237 : vector<2x10xf32>
    %239 = arith.select %238, %236, %206 : vector<2x10xi1>, vector<2x10xf32>
    %240 = arith.select %238, %234, %207 : vector<2x10xi1>, vector<2x10xf32>
    %241 = arith.truncf %239 : vector<2x10xf32> to vector<2x10xbf16>
    %cst_46 = arith.constant dense<0.000000e+00> : vector<2x40xf32>
    %242 = tpu.matmul %241, %6, %cst_46 {dimension_numbers = #tpu.dot_dimension_numbers<[1], [0], [0], [1], [0, 0, 1, 1], [], []>} : vector<2x10xbf16>, vector<10x40xbf16>, vector<2x40xf32> -> vector<2x40xf32>
    %243 = vector.extract_strided_slice %5 {offsets = [14, 0], sizes = [2, 40], strides = [1, 1]} : vector<16x40xf32> to vector<2x40xf32>
    %244 = arith.addf %243, %242 : vector<2x40xf32>
    %245 = vector.extract_strided_slice %244 {offsets = [0, 0], sizes = [2, 10], strides = [1, 1]} : vector<2x40xf32> to vector<2x10xf32>
    %246 = arith.negf %245 : vector<2x10xf32>
    %247 = math.exp %246 : vector<2x10xf32>
    %cst_47 = arith.constant 1.000000e+00 : f32
    %248 = vector.broadcast %cst_47 : f32 to vector<2x10xf32>
    %249 = arith.addf %248, %247 : vector<2x10xf32>
    %250 = arith.divf %248, %249 : vector<2x10xf32>
    %251 = vector.extract_strided_slice %244 {offsets = [0, 10], sizes = [2, 10], strides = [1, 1]} : vector<2x40xf32> to vector<2x10xf32>
    %252 = arith.negf %251 : vector<2x10xf32>
    %253 = math.exp %252 : vector<2x10xf32>
    %cst_48 = arith.constant 1.000000e+00 : f32
    %254 = vector.broadcast %cst_48 : f32 to vector<2x10xf32>
    %255 = arith.addf %254, %253 : vector<2x10xf32>
    %256 = arith.divf %254, %255 : vector<2x10xf32>
    %257 = vector.extract_strided_slice %244 {offsets = [0, 20], sizes = [2, 10], strides = [1, 1]} : vector<2x40xf32> to vector<2x10xf32>
    %258 = math.tanh %257 : vector<2x10xf32>
    %259 = vector.extract_strided_slice %244 {offsets = [0, 30], sizes = [2, 10], strides = [1, 1]} : vector<2x40xf32> to vector<2x10xf32>
    %260 = arith.negf %259 : vector<2x10xf32>
    %261 = math.exp %260 : vector<2x10xf32>
    %cst_49 = arith.constant 1.000000e+00 : f32
    %262 = vector.broadcast %cst_49 : f32 to vector<2x10xf32>
    %263 = arith.addf %262, %261 : vector<2x10xf32>
    %264 = arith.divf %262, %263 : vector<2x10xf32>
    %265 = arith.mulf %256, %240 : vector<2x10xf32>
    %266 = arith.mulf %250, %258 : vector<2x10xf32>
    %267 = arith.addf %265, %266 : vector<2x10xf32>
    %268 = math.tanh %267 : vector<2x10xf32>
    %269 = arith.mulf %264, %268 : vector<2x10xf32>
    %cst_50 = arith.constant 7.000000e+00 : f32
    %270 = vector.broadcast %cst_50 : f32 to vector<2x10xf32>
    %271 = arith.cmpf ogt, %7, %270 : vector<2x10xf32>
    %272 = arith.select %271, %269, %239 : vector<2x10xi1>, vector<2x10xf32>
    %cst_51 = arith.constant 0.000000e+00 : f32
    %273 = vector.broadcast %cst_51 : f32 to vector<2x10xf32>
    %274 = arith.maximumf %272, %273 : vector<2x10xf32>
    %c0_52 = arith.constant 0 : index
    %c0_53 = arith.constant 0 : index
    %275 = vector.load %arg5[%c0_52, %c0_53] : memref<10x10xf32, #tpu.memory_space<vmem>>, vector<10x10xf32>
    %cst_54 = arith.constant dense<0.000000e+00> : vector<2x10xf32>
    %276 = tpu.matmul %274, %275, %cst_54 {dimension_numbers = #tpu.dot_dimension_numbers<[1], [0], [0], [1], [0, 0, 1, 1], [], []>} : vector<2x10xf32>, vector<10x10xf32>, vector<2x10xf32> -> vector<2x10xf32>
    %c0_55 = arith.constant 0 : index
    %c0_56 = arith.constant 0 : index
    %277 = vector.load %arg6[%c0_55, %c0_56] : memref<1x10xf32, #tpu.memory_space<vmem>>, vector<1x10xf32>
    %278 = vector.broadcast %277 : vector<1x10xf32> to vector<2x10xf32>
    %279 = arith.addf %276, %278 : vector<2x10xf32>
    %cst_57 = arith.constant 0.000000e+00 : f32
    %280 = vector.broadcast %cst_57 : f32 to vector<2x10xf32>
    %281 = arith.maximumf %279, %280 : vector<2x10xf32>
    %c0_58 = arith.constant 0 : index
    %c0_59 = arith.constant 0 : index
    %282 = vector.load %arg7[%c0_58, %c0_59] : memref<10x5xf32, #tpu.memory_space<vmem>>, vector<10x5xf32>
    %cst_60 = arith.constant dense<0.000000e+00> : vector<2x5xf32>
    %283 = tpu.matmul %281, %282, %cst_60 {dimension_numbers = #tpu.dot_dimension_numbers<[1], [0], [0], [1], [0, 0, 1, 1], [], []>} : vector<2x10xf32>, vector<10x5xf32>, vector<2x5xf32> -> vector<2x5xf32>
    %c0_61 = arith.constant 0 : index
    %c0_62 = arith.constant 0 : index
    %284 = vector.load %arg8[%c0_61, %c0_62] : memref<1x5xf32, #tpu.memory_space<vmem>>, vector<1x5xf32>
    %285 = vector.broadcast %284 : vector<1x5xf32> to vector<2x5xf32>
    %286 = arith.addf %283, %285 : vector<2x5xf32>
    %cst_63 = arith.constant 0.000000e+00 : f32
    %287 = vector.broadcast %cst_63 : f32 to vector<2x5xf32>
    %288 = arith.maximumf %286, %287 : vector<2x5xf32>
    %c0_64 = arith.constant 0 : index
    %c0_65 = arith.constant 0 : index
    %289 = vector.load %arg9[%c0_64, %c0_65] : memref<5x1xf32, #tpu.memory_space<vmem>>, vector<5x1xf32>
    %cst_66 = arith.constant dense<0.000000e+00> : vector<2x1xf32>
    %290 = tpu.matmul %288, %289, %cst_66 {dimension_numbers = #tpu.dot_dimension_numbers<[1], [0], [0], [1], [0, 0, 1, 1], [], []>} : vector<2x5xf32>, vector<5x1xf32>, vector<2x1xf32> -> vector<2x1xf32>
    %c0_67 = arith.constant 0 : index
    %c0_68 = arith.constant 0 : index
    %291 = vector.load %arg10[%c0_67, %c0_68] : memref<1x1xf32, #tpu.memory_space<vmem>>, vector<1x1xf32>
    %292 = vector.broadcast %291 : vector<1x1xf32> to vector<2x1xf32>
    %293 = arith.addf %290, %292 : vector<2x1xf32>
    %c0_69 = arith.constant 0 : index
    %c0_70 = arith.constant 0 : index
    %294 = vector.load %arg11[%c0_69, %c0_70] : memref<2x1xf32, #tpu.memory_space<vmem>>, vector<2x1xf32>
    tpu.vector_store %arg11[%c0_69, %c0_70], %293 {strides = array<i32>} : memref<2x1xf32, #tpu.memory_space<vmem>>, vector<2x1xf32>,
    return
  }
}

</mosaic_0001>

<bundles_post_ra>
// kernel: lstm_model_forward.1
= control target key start
LH: loop header
LB: loop body
LE: loop exit
PB: predicated region body
PF: predicated region fallthrough
CT: control target
= control target key end

     0   :  { %vm56_vm0 = vcmask 1041408   ;;  %vm94_vm1 = vcmask 1044480   ;;  %vm49_vm2 = vcmask 80896   ;;  %v888_v7 = vmov 0   ;;  %s889_s27 = smov 108   ;;  %s891_s28 = smov 118   ;;  %s1093_s2 = inlined_call_operand.vmem [shape: f32[10,40], index: 2, kind: input, shape index: {}]   ;;  %s1094_s4 = inlined_call_operand.vmem [shape: bf16[10,40], index: 4, kind: input, shape index: {}]   ;;  %s1095_s0 = inlined_call_operand.vmem [shape: f32[16,10], index: 0, kind: input, shape index: {}]   ;;  %s1096_s3 = inlined_call_operand.vmem [shape: f32[1,40], index: 3, kind: input, shape index: {}]   ;;  %s1097_s1 = inlined_call_operand.vmem [shape: f32[2,10], index: 1, kind: input, shape index: {}]   ;;  %s1098_s5 = inlined_call_operand.vmem [shape: f32[10,10], index: 5, kind: input, shape index: {}]   ;;  %s1099_s6 = inlined_call_operand.vmem [shape: f32[1,10], index: 6, kind: input, shape index: {}]   ;;  %s1100_s7 = inlined_call_operand.vmem [shape: f32[10,5], index: 7, kind: input, shape index: {}]   ;;  %s1101_s8 = inlined_call_operand.vmem [shape: f32[1,5], index: 8, kind: input, shape index: {}]   ;;  %s1102_s9 = inlined_call_operand.vmem [shape: f32[5,1], index: 9, kind: input, shape index: {}]   ;;  %s1103_s10 = inlined_call_operand.<no memory space> [shape: f32[1,1], index: 10, kind: input, shape index: {}]   ;;  %s1104_s11 = inlined_call_operand.vmem [shape: f32[2,1], index: 11, kind: output, shape index: {}]  }
   0x1   :  { %v44_v0 = vld [vmem:[%s1093_s2 + $0x8] sm:$0x3]  ;;  %v43_v1 = vld [vmem:[%s1093_s2] sm:$0xff]  ;;  %s892_s29 = smov 20   ;;  %s893_s13 = smov 98  }
   0x2   :  { %v790_v2 = vld [vmem:[%s1094_s4] sm:$0xf]  ;;  %785 = vmatpush.msk.msra.mxu0 %vm56_vm0, %v44_v0  ;;  %v813_v3 = vld [vmem:[%s1094_s4] sm:$0x10] }
   0x3   :  { %v41_v4 = vld [vmem:[%s1095_s0] sm:$0xff]  ;;  %v791_v5 = vor.u32 %v813_v3, %v790_v2 }
   0x4   :  { %75 = vmatpush.msra.mxu0 %v43_v1  ;;  %v975_v8 = vld [vmem:[%s1096_s3] ss:$0 sm:$0xff]  ;;  %s890_s3 = smov 10  }
   0x5   :  { %v96_v6 = vsel %vm94_vm1, %v791_v5, 0  ;;  %786 = vmatmul.msk.f32.vlgmr.msra.gmra.mxu0 %vm49_vm2, %v41_v4  ;;  %v988_v34 = vld [vmem:[%s1097_s1] sm:$0x3] }
   0x6   :  { %105 = vmatpush.bf16.msra.mxu1 %v96_v6  ;;  %171 = vmatpush.bf16.msra.mxu2 %v96_v6  ;;  %vm149_vm7 = vcmp.gt.f32.partialorder %v988_v34, 0.0  ;;  %vm223_vm12 = vcmp.gt.f32.partialorder %v988_v34, 1.0 }
   0x7   :  { %247 = vmatpush.bf16.msra.mxu3 %v96_v6  ;;  %323 = vmatpush.bf16.msrb.mxu0 %v96_v6 }
   0x9   :  { %106 = vmatmul.bf16.vlgmr.msra.gmra.mxu1 %v888_v7 }
   0xa   :  { %399 = vmatpush.bf16.msrb.mxu1 %v96_v6  ;;  %469 = vmatpush.bf16.msrb.mxu2 %v96_v6 }
   0xb   :  { %545 = vmatpush.bf16.msrb.mxu3 %v96_v6  ;;  %621 = vmatpush.bf16.msra.mxu0 %v96_v6 }
  0x82   :  { %v77_v9 = vpop.f32.mrf.mxu0 }
  0x83   :  { %v978_v10 = vadd.f32 %v975_v8, %v77_v9 }
  0x86   :  { %v107_v11 = vpop.f32.mrf.mxu1 }
  0x87   :  { %v111_v12 = vadd.f32 %v107_v11, %v978_v10 }
  0x89   :  { %824 = vtanh.f32 %v111_v12  ;;  %v792_v15 = vmul.f32 -1.442695, %v111_v12 }
  0x8b   :  { %826 = vpow2.f32 %v792_v15 }
  0x8e   :  { %v109_v13 = vpop.f32.mrf.mxu1 }
  0x8f   :  { %v825_v14 = vpop.eup %824 }
  0x90   :  { %134 = vrot.lane.b32.xlu0 %v825_v14, %s889_s27 }
  0x91   :  { %v827_v16 = vpop.eup %826 }
  0x92   :  { %v115_v17 = vadd.f32 1.0, %v827_v16 }
  0x94   :  { %828 = vrcp.f32 %v115_v17  ;;  %v127_v23 = vand.u32 2147483648, %v115_v17  ;;  %vm121_vm4 = vweird.f32 %v115_v17  ;;  %v125_v24 = vand.u32 2147483647, %v115_v17 }
  0x96   :  { %v128_v26 = vor.u32 1.1754944e-38, %v127_v23  ;;  %vm126_vm6 = vcmp.eq.f32.partialorder %v125_v24, 8.507059e+37 }
  0x9a   :  { %v829_v18 = vpop.eup %828 }
  0x9b   :  { %v117_v19 = vmul.f32 %v829_v18, %v115_v17  ;;  %vm122_vm3 = vweird.f32 %v829_v18 }
  0x9c   :  { %vm123_vm5 = vmor %vm121_vm4, %vm122_vm3  ;;  %vm299_vm4 = vcmp.gt.f32.partialorder %v988_v34, 2.0 }
  0x9d   :  { %v118_v20 = vsub.f32 1.0, %v117_v19 }
  0x9f   :  { %v119_v21 = vmul.f32 %v829_v18, %v118_v20 }
  0xa1   :  { %v120_v22 = vadd.f32 %v829_v18, %v119_v21 }
  0xa3   :  { %v124_v25 = vsel %vm123_vm5, %v829_v18, %v120_v22 }
  0xa4   :  { %v129_v28 = vsel %vm126_vm6, %v128_v26, %v124_v25 }
  0xa5   :  { %v132_v30 = vmul.f32 0.0, %v129_v28 }
 0x102   :  { %v135_v27 = vpop.permute.xlu0 %134 }
 0x103   :  { %v137_v29 = vmul.f32 %v135_v27, %v129_v28 }
 0x105   :  { %139 = vrot.lane.b32.xlu0 %v137_v29, %s890_s3 }
 0x177   :  { %v140_v31 = vpop.permute.xlu0 %139 }
 0x178   :  { %v142_v32 = vadd.f32 %v140_v31, %v132_v30 }
 0x17a   :  { %830 = vtanh.f32 %v142_v32  ;;  %156 = vrot.lane.b32.xlu2 %v142_v32, %s891_s28 }
 0x180   :  { %v831_v33 = vpop.eup %830 }
 0x181   :  { %145 = vrot.lane.b32.xlu1 %v831_v33, %s892_s29 }
 0x1d4   :  { %v157_v35 = vpop.permute.xlu2 %156 }
 0x1d5   :  { %v159_v36 = vsel %vm149_vm7, %v157_v35, 0.0 }
 0x1d6   :  { %v202_v37 = vrot.slane %v159_v36, 6 }
 0x1d8   :  { %203 = vrot.lane.b32.xlu0 %v202_v37, %s890_s3 }
 0x1f3   :  { %v146_v38 = vpop.permute.xlu1 %145 }
 0x1f4   :  { %v148_v39 = vmul.f32 %v146_v38, %v129_v28 }
 0x1f6   :  { %151 = vrot.lane.b32.xlu1 %v148_v39, %s893_s13 }
 0x24a   :  { %v204_v63 = vpop.permute.xlu0 %203 }
 0x268   :  { %v152_v40 = vpop.permute.xlu1 %151 }
 0x269   :  { %v154_v41 = vsel %vm149_vm7, %v152_v40, 0.0 }
 0x26a   :  { %v160_v42 = vpack.c.bf16 %v154_v41, %v154_v41 }
 0x26c   :  { %793 = vmatmul.msk.bf16.vlgmr.msra.gmra.mxu2 %vm49_vm2, %v160_v42 }
 0x2ef   :  { %v173_v43 = vpop.f32.mrf.mxu2 }
 0x2f0   :  { %v178_v44 = vrot.slane %v173_v43, 6  ;;  %v42_v43 = vld [vmem:[%s1095_s0 + $0x8] sm:$0xff] }
 0x2f1   :  { %787 = vmatmul.msk.f32.gmra.mxu0 %vm49_vm2, %v42_v43 }
 0x2f2   :  { %v180_v45 = vadd.f32 %v178_v44, %v978_v10 }
 0x2f4   :  { %832 = vtanh.f32 %v180_v45  ;;  %v794_v48 = vmul.f32 -1.442695, %v180_v45 }
 0x2f6   :  { %834 = vpow2.f32 %v794_v48 }
 0x2f7   :  { %v175_v46 = vpop.f32.mrf.mxu2 }
 0x2fa   :  { %v833_v47 = vpop.eup %832 }
 0x2fb   :  { %208 = vrot.lane.b32.xlu2 %v833_v47, %s889_s27 }
 0x2fc   :  { %v835_v49 = vpop.eup %834 }
 0x2fd   :  { %v184_v50 = vadd.f32 1.0, %v835_v49 }
 0x2ff   :  { %836 = vrcp.f32 %v184_v50  ;;  %v196_v56 = vand.u32 2147483648, %v184_v50  ;;  %vm190_vm9 = vweird.f32 %v184_v50  ;;  %v194_v57 = vand.u32 2147483647, %v184_v50 }
 0x301   :  { %v197_v59 = vor.u32 1.1754944e-38, %v196_v56  ;;  %vm195_vm11 = vcmp.eq.f32.partialorder %v194_v57, 8.507059e+37 }
 0x305   :  { %v837_v51 = vpop.eup %836 }
 0x306   :  { %v186_v52 = vmul.f32 %v837_v51, %v184_v50  ;;  %vm191_vm8 = vweird.f32 %v837_v51 }
 0x307   :  { %vm192_vm10 = vmor %vm190_vm9, %vm191_vm8  ;;  %vm375_vm9 = vcmp.gt.f32.partialorder %v988_v34, 3.0 }
 0x308   :  { %v187_v53 = vsub.f32 1.0, %v186_v52 }
 0x30a   :  { %v188_v54 = vmul.f32 %v837_v51, %v187_v53 }
 0x30c   :  { %v189_v55 = vadd.f32 %v837_v51, %v188_v54 }
 0x30e   :  { %v193_v58 = vsel %vm192_vm10, %v837_v51, %v189_v55 }
 0x30f   :  { %v198_v61 = vsel %vm195_vm11, %v197_v59, %v193_v58 }
 0x310   :  { %v206_v0 = vmul.f32 %v204_v63, %v198_v61 }
 0x355   :  { %v209_v60 = vpop.permute.xlu2 %208 }
 0x356   :  { %v211_v62 = vmul.f32 %v209_v60, %v198_v61 }
 0x358   :  { %213 = vrot.lane.b32.xlu1 %v211_v62, %s890_s3 }
 0x36e   :  { %v80_v53 = vpop.f32.mrf.mxu0 }
 0x3ca   :  { %v214_v1 = vpop.permute.xlu1 %213 }
 0x3cb   :  { %v216_v2 = vadd.f32 %v214_v1, %v206_v0 }
 0x3cd   :  { %838 = vtanh.f32 %v216_v2  ;;  %v231_v3 = vrot.slane %v216_v2, 2 }
 0x3cf   :  { %232 = vrot.lane.b32.xlu1 %v231_v3, %s891_s28 }
 0x3d3   :  { %v839_v4 = vpop.eup %838 }
 0x3d4   :  { %219 = vrot.lane.b32.xlu2 %v839_v4, %s892_s29 }
 0x42e   :  { %v220_v5 = vpop.permute.xlu2 %219 }
 0x42f   :  { %v222_v6 = vmul.f32 %v220_v5, %v198_v61 }
 0x431   :  { %v225_v7 = vrot.slane %v222_v6, 2 }
 0x433   :  { %226 = vrot.lane.b32.xlu0 %v225_v7, %s893_s13 }
 0x441   :  { %v233_v9 = vpop.permute.xlu1 %232 }
 0x442   :  { %v235_v11 = vsel %vm223_vm12, %v233_v9, %v159_v36 }
 0x443   :  { %v278_v12 = vrot.slane %v235_v11, 4 }
 0x445   :  { %279 = vrot.lane.b32.xlu0 %v278_v12, %s890_s3 }
 0x4a5   :  { %v227_v13 = vpop.permute.xlu0 %226 }
 0x4a6   :  { %v229_v14 = vsel %vm223_vm12, %v227_v13, %v154_v41 }
 0x4a7   :  { %v236_v15 = vpack.c.bf16 %v229_v14, %v229_v14 }
 0x4a9   :  { %795 = vmatmul.msk.bf16.vlgmr.msra.gmra.mxu3 %vm49_vm2, %v236_v15 }
 0x4b7   :  { %v280_v37 = vpop.permute.xlu0 %279 }
 0x52c   :  { %v249_v16 = vpop.f32.mrf.mxu3 }
 0x52d   :  { %v254_v17 = vrot.slane %v249_v16, 4 }
 0x52f   :  { %v256_v18 = vadd.f32 %v254_v17, %v978_v10 }
 0x531   :  { %840 = vtanh.f32 %v256_v18  ;;  %v796_v21 = vmul.f32 -1.442695, %v256_v18 }
 0x533   :  { %842 = vpow2.f32 %v796_v21 }
 0x534   :  { %v251_v19 = vpop.f32.mrf.mxu3 }
 0x537   :  { %v841_v20 = vpop.eup %840 }
 0x538   :  { %284 = vrot.lane.b32.xlu2 %v841_v20, %s889_s27 }
 0x539   :  { %v843_v22 = vpop.eup %842 }
 0x53a   :  { %v260_v23 = vadd.f32 1.0, %v843_v22 }
 0x53c   :  { %844 = vrcp.f32 %v260_v23  ;;  %v272_v29 = vand.u32 2147483648, %v260_v23  ;;  %vm266_vm14 = vweird.f32 %v260_v23  ;;  %v270_v30 = vand.u32 2147483647, %v260_v23 }
 0x53e   :  { %v273_v32 = vor.u32 1.1754944e-38, %v272_v29  ;;  %vm271_vm3 = vcmp.eq.f32.partialorder %v270_v30, 8.507059e+37 }
 0x542   :  { %v845_v24 = vpop.eup %844 }
 0x543   :  { %v262_v25 = vmul.f32 %v845_v24, %v260_v23  ;;  %vm267_vm13 = vweird.f32 %v845_v24 }
 0x544   :  { %vm268_vm15 = vmor %vm266_vm14, %vm267_vm13  ;;  %vm447_vm14 = vcmp.gt.f32.partialorder %v988_v34, 4.0 }
 0x545   :  { %v263_v26 = vsub.f32 1.0, %v262_v25  ;;  %v1026_v25 = vadd.f32 %v975_v8, %v80_v53 }
 0x547   :  { %v264_v27 = vmul.f32 %v845_v24, %v263_v26 }
 0x549   :  { %v265_v28 = vadd.f32 %v845_v24, %v264_v27 }
 0x54b   :  { %v269_v31 = vsel %vm268_vm15, %v845_v24, %v265_v28 }
 0x54c   :  { %v274_v35 = vsel %vm271_vm3, %v273_v32, %v269_v31 }
 0x54d   :  { %v282_v38 = vmul.f32 %v280_v37, %v274_v35 }
 0x592   :  { %v285_v33 = vpop.permute.xlu2 %284 }
 0x593   :  { %v287_v36 = vmul.f32 %v285_v33, %v274_v35 }
 0x595   :  { %289 = vrot.lane.b32.xlu1 %v287_v36, %s890_s3 }
 0x607   :  { %v290_v39 = vpop.permute.xlu1 %289 }
 0x608   :  { %v292_v40 = vadd.f32 %v290_v39, %v282_v38 }
 0x60a   :  { %846 = vtanh.f32 %v292_v40  ;;  %v307_v41 = vrot.slane %v292_v40, 4 }
 0x60c   :  { %308 = vrot.lane.b32.xlu1 %v307_v41, %s891_s28 }
 0x610   :  { %v847_v42 = vpop.eup %846 }
 0x611   :  { %295 = vrot.lane.b32.xlu2 %v847_v42, %s892_s29 }
 0x66b   :  { %v296_v44 = vpop.permute.xlu2 %295 }
 0x66c   :  { %v298_v45 = vmul.f32 %v296_v44, %v274_v35 }
 0x66e   :  { %v301_v46 = vrot.slane %v298_v45, 4 }
 0x670   :  { %302 = vrot.lane.b32.xlu0 %v301_v46, %s893_s13 }
 0x67e   :  { %v309_v47 = vpop.permute.xlu1 %308 }
 0x67f   :  { %v311_v48 = vsel %vm299_vm4, %v309_v47, %v235_v11 }
 0x680   :  { %v354_v49 = vrot.slane %v311_v48, 2 }
 0x682   :  { %355 = vrot.lane.b32.xlu0 %v354_v49, %s890_s3 }
 0x6e2   :  { %v303_v50 = vpop.permute.xlu0 %302 }
 0x6e3   :  { %v305_v51 = vsel %vm299_vm4, %v303_v50, %v229_v14 }
 0x6e4   :  { %v312_v52 = vpack.c.bf16 %v305_v51, %v305_v51 }
 0x6e6   :  { %797 = vmatmul.msk.bf16.vlgmr.msrb.gmra.mxu0 %vm49_vm2, %v312_v52 }
 0x6f4   :  { %v356_v11 = vpop.permute.xlu0 %355 }
 0x763   :  { %v325_v54 = vpop.f32.mrf.mxu0 }
 0x764   :  { %v330_v55 = vrot.slane %v325_v54, 2 }
 0x766   :  { %v332_v56 = vadd.f32 %v330_v55, %v978_v10 }
 0x768   :  { %848 = vtanh.f32 %v332_v56  ;;  %v798_v59 = vmul.f32 -1.442695, %v332_v56 }
 0x76a   :  { %850 = vpow2.f32 %v798_v59 }
 0x76b   :  { %v327_v57 = vpop.f32.mrf.mxu0 }
 0x76e   :  { %v849_v58 = vpop.eup %848 }
 0x76f   :  { %360 = vrot.lane.b32.xlu2 %v849_v58, %s889_s27 }
 0x770   :  { %v851_v60 = vpop.eup %850 }
 0x771   :  { %v336_v61 = vadd.f32 1.0, %v851_v60 }
 0x773   :  { %852 = vrcp.f32 %v336_v61  ;;  %v348_v3 = vand.u32 2147483648, %v336_v61  ;;  %vm342_vm6 = vweird.f32 %v336_v61  ;;  %v346_v4 = vand.u32 2147483647, %v336_v61 }
 0x775   :  { %v349_v5 = vor.u32 1.1754944e-38, %v348_v3  ;;  %vm347_vm8 = vcmp.eq.f32.partialorder %v346_v4, 8.507059e+37 }
 0x779   :  { %v853_v62 = vpop.eup %852 }
 0x77a   :  { %v338_v63 = vmul.f32 %v853_v62, %v336_v61  ;;  %vm343_vm5 = vweird.f32 %v853_v62 }
 0x77b   :  { %vm344_vm7 = vmor %vm342_vm6, %vm343_vm5  ;;  %vm521_vm6 = vcmp.gt.f32.partialorder %v988_v34, 5.0 }
 0x77c   :  { %v339_v0 = vsub.f32 1.0, %v338_v63 }
 0x77e   :  { %v340_v1 = vmul.f32 %v853_v62, %v339_v0 }
 0x780   :  { %v341_v2 = vadd.f32 %v853_v62, %v340_v1 }
 0x782   :  { %v345_v10 = vsel %vm344_vm7, %v853_v62, %v341_v2 }
 0x783   :  { %v350_v7 = vsel %vm347_vm8, %v349_v5, %v345_v10 }
 0x784   :  { %v358_v12 = vmul.f32 %v356_v11, %v350_v7 }
 0x7c9   :  { %v361_v6 = vpop.permute.xlu2 %360 }
 0x7ca   :  { %v363_v9 = vmul.f32 %v361_v6, %v350_v7 }
 0x7cc   :  { %365 = vrot.lane.b32.xlu1 %v363_v9, %s890_s3 }
 0x83e   :  { %v366_v13 = vpop.permute.xlu1 %365 }
 0x83f   :  { %v368_v14 = vadd.f32 %v366_v13, %v358_v12 }
 0x841   :  { %854 = vtanh.f32 %v368_v14  ;;  %v383_v15 = vrot.slane %v368_v14, 6 }
 0x843   :  { %384 = vrot.lane.b32.xlu1 %v383_v15, %s891_s28 }
 0x847   :  { %v855_v16 = vpop.eup %854 }
 0x848   :  { %371 = vrot.lane.b32.xlu2 %v855_v16, %s892_s29 }
 0x8a2   :  { %v372_v17 = vpop.permute.xlu2 %371 }
 0x8a3   :  { %v374_v18 = vmul.f32 %v372_v17, %v350_v7 }
 0x8a5   :  { %v377_v19 = vrot.slane %v374_v18, 6 }
 0x8a7   :  { %378 = vrot.lane.b32.xlu0 %v377_v19, %s893_s13 }
 0x8b5   :  { %v385_v20 = vpop.permute.xlu1 %384 }
 0x8b6   :  { %v387_v21 = vsel %vm375_vm9, %v385_v20, %v311_v48 }
 0x8b7   :  { %427 = vrot.lane.b32.xlu0 %v387_v21, %s890_s3 }
 0x919   :  { %v379_v22 = vpop.permute.xlu0 %378 }
 0x91a   :  { %v381_v23 = vsel %vm375_vm9, %v379_v22, %v305_v51 }
 0x91b   :  { %v388_v24 = vpack.c.bf16 %v381_v23, %v381_v23 }
 0x91d   :  { %799 = vmatmul.msk.bf16.vlgmr.msrb.gmra.mxu1 %vm49_vm2, %v388_v24 }
 0x929   :  { %v428_v45 = vpop.permute.xlu0 %427 }
 0x99a   :  { %v401_v26 = vpop.f32.mrf.mxu1 }
 0x99b   :  { %v405_v27 = vadd.f32 %v401_v26, %v1026_v25 }
 0x99d   :  { %856 = vtanh.f32 %v405_v27  ;;  %v800_v30 = vmul.f32 -1.442695, %v405_v27 }
 0x99f   :  { %858 = vpow2.f32 %v800_v30 }
 0x9a2   :  { %v403_v28 = vpop.f32.mrf.mxu1 }
 0x9a3   :  { %v857_v29 = vpop.eup %856 }
 0x9a4   :  { %432 = vrot.lane.b32.xlu2 %v857_v29, %s889_s27 }
 0x9a5   :  { %v859_v31 = vpop.eup %858 }
 0x9a6   :  { %v409_v32 = vadd.f32 1.0, %v859_v31 }
 0x9a8   :  { %860 = vrcp.f32 %v409_v32  ;;  %v421_v8 = vand.u32 2147483648, %v409_v32  ;;  %vm415_vm11 = vweird.f32 %v409_v32  ;;  %v419_v39 = vand.u32 2147483647, %v409_v32 }
 0x9aa   :  { %v422_v41 = vor.u32 1.1754944e-38, %v421_v8  ;;  %vm420_vm13 = vcmp.eq.f32.partialorder %v419_v39, 8.507059e+37 }
 0x9ae   :  { %v861_v33 = vpop.eup %860 }
 0x9af   :  { %v411_v35 = vmul.f32 %v861_v33, %v409_v32  ;;  %vm416_vm10 = vweird.f32 %v861_v33 }
 0x9b0   :  { %vm417_vm12 = vmor %vm415_vm11, %vm416_vm10  ;;  %vm597_vm11 = vcmp.gt.f32.partialorder %v988_v34, 6.0 }
 0x9b1   :  { %v412_v36 = vsub.f32 1.0, %v411_v35 }
 0x9b3   :  { %v413_v37 = vmul.f32 %v861_v33, %v412_v36 }
 0x9b5   :  { %v414_v38 = vadd.f32 %v861_v33, %v413_v37 }
 0x9b7   :  { %v418_v40 = vsel %vm417_vm12, %v861_v33, %v414_v38 }
 0x9b8   :  { %v423_v43 = vsel %vm420_vm13, %v422_v41, %v418_v40 }
 0x9b9   :  { %v430_v46 = vmul.f32 %v428_v45, %v423_v43 }
 0x9fe   :  { %v433_v42 = vpop.permute.xlu2 %432 }
 0x9ff   :  { %v435_v44 = vmul.f32 %v433_v42, %v423_v43 }
 0xa01   :  { %437 = vrot.lane.b32.xlu1 %v435_v44, %s890_s3 }
 0xa73   :  { %v438_v47 = vpop.permute.xlu1 %437 }
 0xa74   :  { %v440_v48 = vadd.f32 %v438_v47, %v430_v46 }
 0xa76   :  { %862 = vtanh.f32 %v440_v48  ;;  %454 = vrot.lane.b32.xlu1 %v440_v48, %s891_s28 }
 0xa7c   :  { %v863_v49 = vpop.eup %862 }
 0xa7d   :  { %443 = vrot.lane.b32.xlu2 %v863_v49, %s892_s29 }
 0xad7   :  { %v444_v50 = vpop.permute.xlu2 %443 }
 0xad8   :  { %v446_v51 = vmul.f32 %v444_v50, %v423_v43 }
 0xada   :  { %449 = vrot.lane.b32.xlu0 %v446_v51, %s893_s13 }
 0xae8   :  { %v455_v52 = vpop.permute.xlu1 %454 }
 0xae9   :  { %v457_v53 = vsel %vm447_vm14, %v455_v52, %v387_v21 }
 0xaea   :  { %v500_v54 = vrot.slane %v457_v53, 6 }
 0xaec   :  { %501 = vrot.lane.b32.xlu0 %v500_v54, %s890_s3 }
 0xb4c   :  { %v450_v55 = vpop.permute.xlu0 %449 }
 0xb4d   :  { %v452_v56 = vsel %vm447_vm14, %v450_v55, %v381_v23 }
 0xb4e   :  { %v458_v57 = vpack.c.bf16 %v452_v56, %v452_v56 }
 0xb50   :  { %801 = vmatmul.msk.bf16.vlgmr.msrb.gmra.mxu2 %vm49_vm2, %v458_v57 }
 0xb5e   :  { %v502_v15 = vpop.permute.xlu0 %501 }
 0xbd3   :  { %v471_v58 = vpop.f32.mrf.mxu2 }
 0xbd4   :  { %v476_v59 = vrot.slane %v471_v58, 6 }
 0xbd6   :  { %v478_v60 = vadd.f32 %v476_v59, %v1026_v25 }
 0xbd8   :  { %864 = vtanh.f32 %v478_v60  ;;  %v802_v63 = vmul.f32 -1.442695, %v478_v60 }
 0xbda   :  { %866 = vpow2.f32 %v802_v63 }
 0xbdb   :  { %v473_v61 = vpop.f32.mrf.mxu2 }
 0xbde   :  { %v865_v62 = vpop.eup %864 }
 0xbdf   :  { %506 = vrot.lane.b32.xlu2 %v865_v62, %s889_s27 }
 0xbe0   :  { %v867_v0 = vpop.eup %866 }
 0xbe1   :  { %v482_v1 = vadd.f32 1.0, %v867_v0 }
 0xbe3   :  { %868 = vrcp.f32 %v482_v1  ;;  %v494_v6 = vand.u32 2147483648, %v482_v1  ;;  %vm488_vm3 = vweird.f32 %v482_v1  ;;  %v492_v7 = vand.u32 2147483647, %v482_v1 }
 0xbe5   :  { %v495_v11 = vor.u32 1.1754944e-38, %v494_v6  ;;  %vm493_vm5 = vcmp.eq.f32.partialorder %v492_v7, 8.507059e+37 }
 0xbe9   :  { %v869_v2 = vpop.eup %868 }
 0xbea   :  { %v484_v3 = vmul.f32 %v869_v2, %v482_v1  ;;  %vm489_vm15 = vweird.f32 %v869_v2 }
 0xbeb   :  { %vm490_vm4 = vmor %vm488_vm3, %vm489_vm15  ;;  %vm673_vm3 = vcmp.gt.f32.partialorder %v988_v34, 7.0  ;;  %v16_v34 = vstv %s1103_s10 }
 0xbec   :  { %v485_v4 = vsub.f32 1.0, %v484_v3  ;;  %17 = vst [vmem:[#allocation2] sm:$0x1] %v16_v34 }
 0xbee   :  { %v486_v10 = vmul.f32 %v869_v2, %v485_v4 }
 0xbf0   :  { %v487_v5 = vadd.f32 %v869_v2, %v486_v10 }
 0xbf2   :  { %v491_v9 = vsel %vm490_vm4, %v869_v2, %v487_v5 }
 0xbf3   :  { %v496_v13 = vsel %vm493_vm5, %v495_v11, %v491_v9 }
 0xbf4   :  { %v504_v16 = vmul.f32 %v502_v15, %v496_v13 }
 0xc39   :  { %v507_v12 = vpop.permute.xlu2 %506 }
 0xc3a   :  { %v509_v14 = vmul.f32 %v507_v12, %v496_v13 }
 0xc3c   :  { %511 = vrot.lane.b32.xlu1 %v509_v14, %s890_s3 }
 0xcae   :  { %v512_v17 = vpop.permute.xlu1 %511 }
 0xcaf   :  { %v514_v18 = vadd.f32 %v512_v17, %v504_v16 }
 0xcb1   :  { %870 = vtanh.f32 %v514_v18  ;;  %v529_v19 = vrot.slane %v514_v18, 2 }
 0xcb3   :  { %530 = vrot.lane.b32.xlu1 %v529_v19, %s891_s28 }
 0xcb7   :  { %v871_v20 = vpop.eup %870 }
 0xcb8   :  { %517 = vrot.lane.b32.xlu2 %v871_v20, %s892_s29 }
 0xd12   :  { %v518_v21 = vpop.permute.xlu2 %517 }
 0xd13   :  { %v520_v22 = vmul.f32 %v518_v21, %v496_v13 }
 0xd15   :  { %v523_v23 = vrot.slane %v520_v22, 2 }
 0xd17   :  { %524 = vrot.lane.b32.xlu0 %v523_v23, %s893_s13 }
 0xd25   :  { %v531_v24 = vpop.permute.xlu1 %530 }
 0xd26   :  { %v533_v26 = vsel %vm521_vm6, %v531_v24, %v457_v53 }
 0xd27   :  { %v576_v27 = vrot.slane %v533_v26, 4 }
 0xd29   :  { %577 = vrot.lane.b32.xlu0 %v576_v27, %s890_s3 }
 0xd89   :  { %v525_v28 = vpop.permute.xlu0 %524 }
 0xd8a   :  { %v527_v29 = vsel %vm521_vm6, %v525_v28, %v452_v56  ;;  %v682_v28 = vld [vmem:[%s1098_s5 + $0x8] sm:$0x3] }
 0xd8b   :  { %v534_v30 = vpack.c.bf16 %v527_v29, %v527_v29  ;;  %807 = vmatpush.msk.msra.mxu1 %vm56_vm0, %v682_v28 }
 0xd8d   :  { %803 = vmatmul.msk.bf16.vlgmr.msrb.gmra.mxu3 %vm49_vm2, %v534_v30 }
 0xd9b   :  { %v578_v51 = vpop.permute.xlu0 %577 }
 0xe10   :  { %v547_v31 = vpop.f32.mrf.mxu3 }
 0xe11   :  { %v552_v32 = vrot.slane %v547_v31, 4 }
 0xe13   :  { %v554_v33 = vadd.f32 %v552_v32, %v1026_v25 }
 0xe15   :  { %872 = vtanh.f32 %v554_v33  ;;  %v804_v37 = vmul.f32 -1.442695, %v554_v33  ;;  %v715_v33 = vld [vmem:[%s1100_s7 + $0x8] sm:$0x3] }
 0xe16   :  { %809 = vmatpush.msk.msra.mxu2 %vm56_vm0, %v715_v33  ;;  %vm752_vm0 = vcmask 39936  }
 0xe17   :  { %874 = vpow2.f32 %v804_v37 }
 0xe18   :  { %v549_v35 = vpop.f32.mrf.mxu3 }
 0xe19   :  { %v714_v35 = vld [vmem:[%s1100_s7] sm:$0xff] }
 0xe1a   :  { %741 = vmatpush.msra.mxu2 %v714_v35 }
 0xe1b   :  { %v873_v36 = vpop.eup %872 }
 0xe1c   :  { %582 = vrot.lane.b32.xlu2 %v873_v36, %s889_s27 }
 0xe1d   :  { %v875_v38 = vpop.eup %874 }
 0xe1e   :  { %v558_v8 = vadd.f32 1.0, %v875_v38 }
 0xe20   :  { %876 = vrcp.f32 %v558_v8  ;;  %v570_v44 = vand.u32 2147483648, %v558_v8  ;;  %vm564_vm8 = vweird.f32 %v558_v8  ;;  %v568_v45 = vand.u32 2147483647, %v558_v8 }
 0xe22   :  { %v571_v47 = vor.u32 1.1754944e-38, %v570_v44  ;;  %vm569_vm10 = vcmp.eq.f32.partialorder %v568_v45, 8.507059e+37 }
 0xe26   :  { %v877_v39 = vpop.eup %876 }
 0xe27   :  { %v560_v40 = vmul.f32 %v877_v39, %v558_v8  ;;  %vm565_vm7 = vweird.f32 %v877_v39  ;;  %v747_v8 = vld [vmem:[%s1102_s9] sm:$0x1f] }
 0xe28   :  { %vm566_vm9 = vmor %vm564_vm8, %vm565_vm7  ;;  %811 = vmatpush.msk.msra.mxu3 %vm94_vm1, %v747_v8  ;;  %vm779_vm1 = vcmask 1024  }
 0xe29   :  { %v561_v41 = vsub.f32 1.0, %v560_v40 }
 0xe2b   :  { %v562_v42 = vmul.f32 %v877_v39, %v561_v41 }
 0xe2d   :  { %v563_v43 = vadd.f32 %v877_v39, %v562_v42 }
 0xe2f   :  { %v567_v46 = vsel %vm566_vm9, %v877_v39, %v563_v43  ;;  %v821_v39 = vld [vmem:[%s1099_s6] ss:$0 sm:$0xff] }
 0xe30   :  { %v572_v49 = vsel %vm569_vm10, %v571_v47, %v567_v46  ;;  %v822_v43 = vld [vmem:[%s1101_s8] ss:$0 sm:$0xff] }
 0xe31   :  { %v580_v52 = vmul.f32 %v578_v51, %v572_v49  ;;  %v823_v47 = vld [vmem:[#allocation2] ss:$0 sm:$0xff] }
 0xe76   :  { %v583_v48 = vpop.permute.xlu2 %582 }
 0xe77   :  { %v585_v50 = vmul.f32 %v583_v48, %v572_v49 }
 0xe79   :  { %587 = vrot.lane.b32.xlu1 %v585_v50, %s890_s3 }
 0xeeb   :  { %v588_v53 = vpop.permute.xlu1 %587 }
 0xeec   :  { %v590_v54 = vadd.f32 %v588_v53, %v580_v52 }
 0xeee   :  { %878 = vtanh.f32 %v590_v54  ;;  %v605_v55 = vrot.slane %v590_v54, 4 }
 0xef0   :  { %606 = vrot.lane.b32.xlu1 %v605_v55, %s891_s28 }
 0xef4   :  { %v879_v56 = vpop.eup %878 }
 0xef5   :  { %593 = vrot.lane.b32.xlu2 %v879_v56, %s892_s29 }
 0xf4f   :  { %v594_v57 = vpop.permute.xlu2 %593 }
 0xf50   :  { %v596_v58 = vmul.f32 %v594_v57, %v572_v49 }
 0xf52   :  { %v599_v59 = vrot.slane %v596_v58, 4 }
 0xf54   :  { %600 = vrot.lane.b32.xlu0 %v599_v59, %s893_s13 }
 0xf62   :  { %v607_v60 = vpop.permute.xlu1 %606 }
 0xf63   :  { %v609_v61 = vsel %vm597_vm11, %v607_v60, %v533_v26 }
 0xf64   :  { %v652_v62 = vrot.slane %v609_v61, 2 }
 0xf66   :  { %653 = vrot.lane.b32.xlu0 %v652_v62, %s890_s3 }
 0xfc6   :  { %v601_v63 = vpop.permute.xlu0 %600 }
 0xfc7   :  { %v603_v0 = vsel %vm597_vm11, %v601_v63, %v527_v29  ;;  %v681_v29 = vld [vmem:[%s1098_s5] sm:$0xff] }
 0xfc8   :  { %v610_v1 = vpack.c.bf16 %v603_v0, %v603_v0  ;;  %708 = vmatpush.msra.mxu1 %v681_v29 }
 0xfca   :  { %805 = vmatmul.msk.bf16.vlgmr.msra.gmra.mxu0 %vm49_vm2, %v610_v1 }
 0xfd8   :  { %v654_v22 = vpop.permute.xlu0 %653 }
0x1047   :  { %v623_v2 = vpop.f32.mrf.mxu0 }
0x1048   :  { %v628_v3 = vrot.slane %v623_v2, 2 }
0x104a   :  { %v630_v4 = vadd.f32 %v628_v3, %v1026_v25 }
0x104c   :  { %880 = vtanh.f32 %v630_v4  ;;  %v806_v6 = vmul.f32 -1.442695, %v630_v4 }
0x104e   :  { %882 = vpow2.f32 %v806_v6 }
0x104f   :  { %v625_v10 = vpop.f32.mrf.mxu0 }
0x1052   :  { %v881_v5 = vpop.eup %880 }
0x1053   :  { %658 = vrot.lane.b32.xlu2 %v881_v5, %s889_s27 }
0x1054   :  { %v883_v7 = vpop.eup %882 }
0x1055   :  { %v634_v9 = vadd.f32 1.0, %v883_v7 }
0x1057   :  { %884 = vrcp.f32 %v634_v9  ;;  %v646_v16 = vand.u32 2147483648, %v634_v9  ;;  %vm640_vm13 = vweird.f32 %v634_v9  ;;  %v644_v17 = vand.u32 2147483647, %v634_v9 }
0x1059   :  { %v647_v18 = vor.u32 1.1754944e-38, %v646_v16  ;;  %vm645_vm15 = vcmp.eq.f32.partialorder %v644_v17, 8.507059e+37 }
0x105d   :  { %v885_v11 = vpop.eup %884 }
0x105e   :  { %v636_v12 = vmul.f32 %v885_v11, %v634_v9  ;;  %vm641_vm12 = vweird.f32 %v885_v11 }
0x105f   :  { %vm642_vm14 = vmor %vm640_vm13, %vm641_vm12 }
0x1060   :  { %v637_v13 = vsub.f32 1.0, %v636_v12 }
0x1062   :  { %v638_v14 = vmul.f32 %v885_v11, %v637_v13 }
0x1064   :  { %v639_v15 = vadd.f32 %v885_v11, %v638_v14 }
0x1066   :  { %v643_v25 = vsel %vm642_vm14, %v885_v11, %v639_v15 }
0x1067   :  { %v648_v20 = vsel %vm645_vm15, %v647_v18, %v643_v25 }
0x1068   :  { %v656_v23 = vmul.f32 %v654_v22, %v648_v20 }
0x10ad   :  { %v659_v19 = vpop.permute.xlu2 %658 }
0x10ae   :  { %v661_v21 = vmul.f32 %v659_v19, %v648_v20 }
0x10b0   :  { %663 = vrot.lane.b32.xlu1 %v661_v21, %s890_s3 }
0x1122   :  { %v664_v24 = vpop.permute.xlu1 %663 }
0x1123   :  { %v666_v26 = vadd.f32 %v664_v24, %v656_v23 }
0x1125   :  { %886 = vtanh.f32 %v666_v26 }
0x112b   :  { %v887_v27 = vpop.eup %886 }
0x112c   :  { %669 = vrot.lane.b32.xlu2 %v887_v27, %s892_s29 }
0x1186   :  { %v670_v30 = vpop.permute.xlu2 %669 }
0x1187   :  { %v672_v31 = vmul.f32 %v670_v30, %v648_v20 }
0x1189   :  { %v675_v32 = vrot.slane %v672_v31, 6 }
0x118b   :  { %676 = vrot.lane.b32.xlu0 %v675_v32, %s893_s13 }
0x11fd   :  { %v677_v36 = vpop.permute.xlu0 %676 }
0x11fe   :  { %v679_v37 = vsel %vm673_vm3, %v677_v36, %v603_v0 }
0x11ff   :  { %v680_v38 = vmax.f32 %v679_v37, 0.0 }
0x1201   :  { %808 = vmatmul.msk.f32.vlgmr.msra.gmra.mxu1 %vm49_vm2, %v680_v38 }
0x127e   :  { %v710_v40 = vpop.f32.mrf.mxu1 }
0x127f   :  { %v711_v41 = vadd.f32 %v821_v39, %v710_v40 }
0x1281   :  { %v713_v42 = vmax.f32 %v711_v41, 0.0 }
0x1283   :  { %810 = vmatmul.msk.f32.vlgmr.msra.gmra.mxu2 %vm49_vm2, %v713_v42 }
0x1306   :  { %v743_v44 = vpop.f32.mrf.mxu2 }
0x1307   :  { %v744_v45 = vadd.f32 %v822_v43, %v743_v44 }
0x1309   :  { %v746_v46 = vmax.f32 %v744_v45, 0.0 }
0x130b   :  { %812 = vmatmul.msk.f32.vlgmr.msra.gmra.mxu3 %vm752_vm0, %v746_v46 }
0x138e   :  { %v776_v48 = vpop.f32.mrf.mxu3 }
0x138f   :  { %v777_v49 = vadd.f32 %v823_v47, %v776_v48 }
0x1391   :  { %780 = vst.msk [vmem:[%s1104_s11] sm:$0x3] %vm779_vm1, %v777_v49 }

</bundles_post_ra>
